<compile_context>
chip_gen: v5e
topology: v5e:2x2
jax: 0.10.0
libtpu: 0.0.40
codegen_flags: <defaults>
</compile_context>

<pallas_src>
import jax
import jax.numpy as jnp
from jax.experimental import pallas as pl
from jax.experimental.pallas import tpu as pltpu


def _binary_softmax_kernel(x_ref, y_ref, wx_ref, wy_ref, b_ref, out_ref):
    # x_ref: (Nb, Dx) row tile, y_ref: (Nb, Dy) row tile,
    # wx_ref: (1, Dx), wy_ref: (1, Dy) full weight slices (resident across grid),
    # b_ref: (1,) scalar bias in SMEM, out_ref: (Nb, 1).
    x = x_ref[...].astype(jnp.float32)
    y = y_ref[...].astype(jnp.float32)
    wx = wx_ref[...].astype(jnp.float32)          # (1, Dx) broadcasts over rows
    wy = wy_ref[...].astype(jnp.float32)          # (1, Dy)
    b = b_ref[0]

    # Fused concat + Linear(D -> 1): VPU multiply, XLU lane reduction.
    score = (jnp.sum(x * wx, axis=-1, keepdims=True)
             + jnp.sum(y * wy, axis=-1, keepdims=True)
             + b)                                  # (Nb, 1)

    # sigmoid
    out_ref[...] = (1.0 / (1.0 + jnp.exp(-score))).astype(out_ref.dtype)


def binary_softmax(x, y, weight, bias, *, block_rows=None, vmem_limit_bytes=None):
    """x: (..., Dx); y: (..., Dy); weight: (1, Dx+Dy); bias: (1,). Returns (..., 1)."""
    *lead, Dx = x.shape
    Dy = y.shape[-1]
    assert tuple(y.shape[:-1]) == tuple(lead), "x and y must share leading dims"
    D = Dx + Dy
    assert weight.shape == (1, D)

    N = 1
    for d in lead:
        N *= int(d)

    x2 = x.reshape(N, Dx)
    y2 = y.reshape(N, Dy)
    wx = weight[:, :Dx]                            # (1, Dx)
    wy = weight[:, Dx:]                            # (1, Dy)
    b = bias.reshape(1).astype(jnp.float32)        # (1,) scalar for SMEM

    # Pick a row tile: keep 2 inputs x double-buffering well under the scoped
    # VMEM limit on every chip (v5e 16 MiB default, v7x 64 MiB physical).
    itemsize = max(jnp.dtype(x.dtype).itemsize, jnp.dtype(y.dtype).itemsize)
    if block_rows is None:
        budget = 8 * 1024 * 1024                   # double-buffered input bytes
        bn = max(8, min(1024, budget // (2 * D * itemsize)))
        bn = (bn // 8) * 8
        block_rows = min(bn, max(8, ((N + 7) // 8) * 8))

    # Pad rows up to a multiple of the tile; padded rows are sliced off after.
    Np = ((N + block_rows - 1) // block_rows) * block_rows
    if Np != N:
        x2 = jnp.pad(x2, ((0, Np - N), (0, 0)))
        y2 = jnp.pad(y2, ((0, Np - N), (0, 0)))

    grid = (pl.cdiv(Np, block_rows),)

    out = pl.pallas_call(
        _binary_softmax_kernel,
        out_shape=jax.ShapeDtypeStruct((Np, 1), jnp.float32),
        grid=grid,
        in_specs=[
            pl.BlockSpec((block_rows, Dx), lambda i: (i, 0)),        # x row tile
            pl.BlockSpec((block_rows, Dy), lambda i: (i, 0)),        # y row tile
            pl.BlockSpec((1, Dx), lambda i: (0, 0)),                 # w_x (resident)
            pl.BlockSpec((1, Dy), lambda i: (0, 0)),                 # w_y (resident)
            pl.BlockSpec(memory_space=pltpu.MemorySpace.SMEM),       # bias scalar
        ],
        out_specs=pl.BlockSpec((block_rows, 1), lambda i: (i, 0)),
        compiler_params=pltpu.CompilerParams(
            dimension_semantics=("parallel",),
            vmem_limit_bytes=vmem_limit_bytes,
        ),
    )(x2, y2, wx, wy, b)

    return out[:N].reshape(*lead, 1)


if __name__ == "__main__":
    B, T, Dx, Dy = 2, 8, 32, 32
    D = Dx + Dy
    key = jax.random.PRNGKey(0)
    kx, ky, kw, kb = jax.random.split(key, 4)

    # Deterministic params matching nn.Linear(D, 1) init: U(-1/sqrt(D), 1/sqrt(D))
    bound = 1.0 / (D ** 0.5)
    weight = jax.random.uniform(kw, (1, D), jnp.float32, -bound, bound)
    bias = jax.random.uniform(kb, (1,), jnp.float32, -bound, bound)

    x = jax.random.normal(kx, (B, T, Dx), jnp.float32)
    y = jax.random.normal(ky, (B, T, Dy), jnp.float32)

    # block_rows=8 -> 16 rows / 8 = grid of 2, exercising the tiled pipeline.
    out = binary_softmax(x, y, weight, bias, block_rows=8)
    out = jax.block_until_ready(out)

    # Pure-JAX reference: concat -> Linear -> sigmoid
    rep = jnp.concatenate([x, y], axis=-1).reshape(-1, D)
    logits = rep @ weight.T + bias
    ref = jax.nn.sigmoid(logits).reshape(B, T, 1)

    assert out.shape == (B, T, 1)
    assert jnp.allclose(out, ref, atol=1e-5, rtol=1e-5)
    print("KERNEL_OK")
</pallas_src>

<mosaic_0001>
module attributes {stable_mosaic.version = 11 : i64} {
  func.func @_binary_softmax_kernel(%arg0: i32, %arg1: memref<8x32xf32, #tpu.memory_space<vmem>>, %arg2: memref<8x32xf32, #tpu.memory_space<vmem>>, %arg3: memref<1x32xf32, #tpu.memory_space<vmem>>, %arg4: memref<1x32xf32, #tpu.memory_space<vmem>>, %arg5: memref<1xf32, #tpu.memory_space<smem>>, %arg6: memref<8x1xf32, #tpu.memory_space<vmem>>) attributes {dimension_semantics = [#tpu.dimension_semantics<parallel>], iteration_bounds = array<i64: 2>, scalar_prefetch = 0 : i64, scratch_operands = 0 : i64, tpu.core_type = #tpu.core_type<tc>, window_params = [{transform_indices = @transform_0, window_bounds = array<i64: 8, 32>}, {transform_indices = @transform_1, window_bounds = array<i64: 8, 32>}, {pipeline_mode = #tpu.pipeline_mode<synchronous>, transform_indices = @transform_2, window_bounds = array<i64: 1, 32>}, {pipeline_mode = #tpu.pipeline_mode<synchronous>, transform_indices = @transform_3, window_bounds = array<i64: 1, 32>}, {transform_indices = @transform_4, window_bounds = array<i64: 1>}, {transform_indices = @transform_5, window_bounds = array<i64: 8, 1>}]} {
    %c0 = arith.constant 0 : index
    %c0_0 = arith.constant 0 : index
    %0 = vector.load %arg1[%c0, %c0_0] : memref<8x32xf32, #tpu.memory_space<vmem>>, vector<8x32xf32>
    %c0_1 = arith.constant 0 : index
    %c0_2 = arith.constant 0 : index
    %1 = vector.load %arg2[%c0_1, %c0_2] : memref<8x32xf32, #tpu.memory_space<vmem>>, vector<8x32xf32>
    %c0_3 = arith.constant 0 : index
    %c0_4 = arith.constant 0 : index
    %2 = vector.load %arg3[%c0_3, %c0_4] : memref<1x32xf32, #tpu.memory_space<vmem>>, vector<1x32xf32>
    %c0_5 = arith.constant 0 : index
    %c0_6 = arith.constant 0 : index
    %3 = vector.load %arg4[%c0_5, %c0_6] : memref<1x32xf32, #tpu.memory_space<vmem>>, vector<1x32xf32>
    %c0_7 = arith.constant 0 : index
    %4 = memref.load %arg5[%c0_7] : memref<1xf32, #tpu.memory_space<smem>>
    %5 = vector.broadcast %2 : vector<1x32xf32> to vector<8x32xf32>
    %6 = arith.mulf %0, %5 : vector<8x32xf32>
    %cst = arith.constant dense<0.000000e+00> : vector<8xf32>
    %7 = vector.multi_reduction <add>, %6, %cst [1] : vector<8x32xf32> to vector<8xf32>
    %8 = vector.shape_cast %7 : vector<8xf32> to vector<8x1xf32>
    %9 = vector.broadcast %3 : vector<1x32xf32> to vector<8x32xf32>
    %10 = arith.mulf %1, %9 : vector<8x32xf32>
    %cst_8 = arith.constant dense<0.000000e+00> : vector<8xf32>
    %11 = vector.multi_reduction <add>, %10, %cst_8 [1] : vector<8x32xf32> to vector<8xf32>
    %12 = vector.shape_cast %11 : vector<8xf32> to vector<8x1xf32>
    %13 = arith.addf %8, %12 : vector<8x1xf32>
    %14 = vector.broadcast %4 : f32 to vector<8x1xf32>
    %15 = arith.addf %13, %14 : vector<8x1xf32>
    %cst_9 = arith.constant 0.000000e+00 : f32
    %16 = vector.broadcast %cst_9 : f32 to vector<8x1xf32>
    %17 = arith.subf %16, %15 : vector<8x1xf32>
    %18 = math.exp %17 : vector<8x1xf32>
    %cst_10 = arith.constant 1.000000e+00 : f32
    %19 = vector.broadcast %cst_10 : f32 to vector<8x1xf32>
    %20 = arith.addf %19, %18 : vector<8x1xf32>
    %cst_11 = arith.constant 1.000000e+00 : f32
    %21 = vector.broadcast %cst_11 : f32 to vector<8x1xf32>
    %22 = arith.divf %21, %20 : vector<8x1xf32>
    %c0_12 = arith.constant 0 : index
    %c0_13 = arith.constant 0 : index
    %23 = vector.load %arg6[%c0_12, %c0_13] : memref<8x1xf32, #tpu.memory_space<vmem>>, vector<8x1xf32>
    tpu.vector_store %arg6[%c0_12, %c0_13], %22 {strides = array<i32>} : memref<8x1xf32, #tpu.memory_space<vmem>>, vector<8x1xf32>,
    return
  }
  func.func @transform_0(%arg0: i32) -> (i32, i32) {
    %c0_i32 = arith.constant 0 : i32
    %c0_i32_0 = arith.constant 0 : i32
    return %arg0, %c0_i32 : i32, i32
  }
  func.func @transform_1(%arg0: i32) -> (i32, i32) {
    %c0_i32 = arith.constant 0 : i32
    %c0_i32_0 = arith.constant 0 : i32
    return %arg0, %c0_i32 : i32, i32
  }
  func.func @transform_2(%arg0: i32) -> (i32, i32) {
    %c0_i32 = arith.constant 0 : i32
    %c0_i32_0 = arith.constant 0 : i32
    %c0_i32_1 = arith.constant 0 : i32
    return %c0_i32, %c0_i32_0 : i32, i32
  }
  func.func @transform_3(%arg0: i32) -> (i32, i32) {
    %c0_i32 = arith.constant 0 : i32
    %c0_i32_0 = arith.constant 0 : i32
    %c0_i32_1 = arith.constant 0 : i32
    return %c0_i32, %c0_i32_0 : i32, i32
  }
  func.func @transform_4(%arg0: i32) -> i32 {
    %c0_i32 = arith.constant 0 : i32
    %c0_i32_0 = arith.constant 0 : i32
    return %c0_i32 : i32
  }
  func.func @transform_5(%arg0: i32) -> (i32, i32) {
    %c0_i32 = arith.constant 0 : i32
    %c0_i32_0 = arith.constant 0 : i32
    return %arg0, %c0_i32 : i32, i32
  }
}

</mosaic_0001>

<bundles_post_ra>
// kernel: tpu_custom_call.1
= control target key start
LH: loop header
LB: loop body
LE: loop exit
PB: predicated region body
PF: predicated region fallthrough
CT: control target
= control target key end

     0   :  { %s742_s0 = inlined_call_operand.hbm [shape: f32[16,32], index: 0, kind: input, shape index: {}]   ;;  %s743_s1 = inlined_call_operand.hbm [shape: f32[16,32], index: 1, kind: input, shape index: {}]   ;;  %s744_s2 = inlined_call_operand.vmem [shape: f32[1,32], index: 2, kind: input, shape index: {}]   ;;  %s745_s3 = inlined_call_operand.vmem [shape: f32[1,32], index: 3, kind: input, shape index: {}]   ;;  %s746_s4 = inlined_call_operand.<no memory space> [shape: f32[1], index: 4, kind: input, shape index: {}]   ;;  %s747_s5 = inlined_call_operand.vmem [shape: f32[16,1], index: 5, kind: output, shape index: {}]  }
   0x1   :  { %10 = sst [smem:[#allocation2]] %s746_s4 }
   0x2   :  { %11 = vsyncpa [#allocation4], 0 }
   0x3   :  { %13 = vsyncpa [#allocation4 + $0x1], 0 }
   0x4   :  { %14 = vsyncpa [#allocation6], 0 }
   0x5   :  { %16 = vsyncpa [#allocation6 + $0x1], 0  ;;  %s610_s20 = smov 0   ;;  %s612_s21 = smov 0  }
   0x6   :  { %s614_s22 = smov 0   ;;  %s616_s23 = smov 0  }
   0x7 LB: > { %s629_s4 = sadd.s32 4294967295, %s575_s23   ;;  %s632_s24 = sadd.s32 1, %s575_s23   ;;  %s575_s23 = sphi %s616_s23, %s755_s23   ;;  %s571_s22 = sphi %s614_s22, %s754_s22   ;;  %s567_s21 = sphi %s612_s21, %s753_s21   ;;  %s563_s20 = sphi %s610_s20, %s752_s20  }
   0x8   : > { %s26_s25 = ssub.s32 %s575_s23, %s632_s24  ;;  %s29_s26 = sadd.s32 1, %s571_s22 }
   0x9   : > { %p27_p0 = scmp.eq.s32.totalorder %s26_s25, 0  ;;  %p36_p1 = scmp.ne.s32.totalorder %s571_s22, %s567_s21 }
   0xa   : > { %p37_p2 = scmp.eq.s32.totalorder %s575_s23, 0  ;;  %p42_p3 = scmp.ne.s32.totalorder %s567_s21, %s563_s20 }
   0xb   : > { %s642_s27 = scalar_select %p27_p0, %s571_s22, %s29_s26  }
   0xc   : > { %p644_p4 = por %p37_p2, %p36_p1  ;;  %p43_p5 = scmp.eq.s32.totalorder %s629_s4, 0 }
   0xd   : > { %p438_p6 = scmp.lt.s32.totalorder %s575_s23, 2  ;;  %s655_s30 = sand.u32 1, %s571_s22  }
   0xe   : > { %p650_p7 = por %p43_p5, %p42_p3  ;;  %s417_s6 = sshll.u32 %s655_s30, 3 }
   0xf   : > { %s418_s7 = sshll.u32 %s575_s23, 3  ;;  %s194_s11 = scalar_lea.vmem [#allocation3], %s417_s6 }
  0x10   : > { %s198_s10 = scalar_lea.hbm %s742_s0, %s418_s7  ;;  %s202_s12 = sshll.u32 %s194_s11, 4  ;;  %s203_s12 = int_to_ptr.vmem [resolvable:$true] %s202_s12 }
  0x11   : > { %s200_s13 = sshll.u32 %s198_s10, 4  ;;  %p664_p8 = pnand %p438_p6, %p644_p4  ;;  %s201_s13 = int_to_ptr.hbm [resolvable:$true] %s200_s13 }
  0x12   : > { %p421_p9 = scmp.ge.s32.totalorder %s575_s23, 1  ;;  %p226_p10 = scmp.lt.s32.totalorder %s575_s23, 3 }
  0x13   : > { %s191_s15 = scalar_lea.sflag [#allocation4], %s655_s30  ;;  %s477_s16 = sshra.s32 %s201_s13, 4  ;;  %s478_s16 = int_to_ptr.hbm [resolvable:$true] %s477_s16 }
  0x14   : > { %s479_s17 = scalar_lea.hbm %s478_s16, 8  ;;  %p481_p12 = pneg %p664_p8 }
  0x15   : > { %p480_p11 = scmp.ne.s32.totalorder %s478_s16, %s479_s17  ;;  %s484_s20 = scalar_lea.hbm %s742_s0, 16 }
  0x16   : > { %p485_p1 = scmp.lt.s32.totalorder %s478_s16, %s742_s0  ;;  %p486_p2 = scmp.lt.s32.totalorder %s484_s20, %s479_s17 }
  0x17   : > { %p482_p13 = pnand %p481_p12, %p480_p11 }
  0x18   : > { %p487_p3 = por %p486_p2, %p485_p1 }
  0x19   : > { %p483_p0 = pneg %p482_p13 }
  0x1b   : > { %p488_p4 = pnand %p487_p3, %p483_p0 }
  0x1d   : > { %491 = shalt.err (!%p488_p4)
}
  0x1e   : > { %434 = dma.hbm_to_vmem [thread:$0]  (!%p664_p8), %s201_s13, 128, %s203_s12, %s191_s15  }
  0x1f   : > { %p688_p5 = pnand %p421_p9, %p226_p10  ;;  %s217_s10 = scalar_lea.hbm %s743_s1, %s418_s7 }
  0x20   : > { %s213_s11 = scalar_lea.vmem [#allocation5], %s417_s6  ;;  %s219_s17 = sshll.u32 %s217_s10, 4  ;;  %s220_s17 = int_to_ptr.hbm [resolvable:$true] %s219_s17 }
  0x21   : > { %s221_s16 = sshll.u32 %s213_s11, 4  ;;  %s210_s18 = scalar_lea.sflag [#allocation6], %s655_s30  ;;  %s222_s16 = int_to_ptr.vmem [resolvable:$true] %s221_s16 }
  0x22   : > { %s507_s19 = sshra.s32 %s220_s17, 4  ;;  %s514_s13 = scalar_lea.hbm %s743_s1, 16  ;;  %s508_s19 = int_to_ptr.hbm [resolvable:$true] %s507_s19 }
  0x23   : > { %s509_s20 = scalar_lea.hbm %s508_s19, 8  ;;  %p515_p11 = scmp.lt.s32.totalorder %s508_s19, %s743_s1 }
  0x24   : > { %p510_p6 = scmp.ne.s32.totalorder %s508_s19, %s509_s20  ;;  %p516_p13 = scmp.lt.s32.totalorder %s514_s13, %s509_s20 }
  0x26   : > { %p512_p9 = pnand %p510_p6, %p481_p12  ;;  %p517_p0 = por %p516_p13, %p515_p11 }
  0x28   : > { %p513_p10 = pneg %p512_p9 }
  0x2a   : > { %p518_p1 = pnand %p517_p0, %p513_p10 }
  0x2c   : > { %521 = shalt.err (!%p518_p1)
}
  0x2d   : > { %437 = dma.hbm_to_vmem [thread:$0]  (!%p664_p8), %s220_s17, 128, %s222_s16, %s210_s18  }
  0x2e   : > { %230 = sbr.rel (%p688_p5) target bundleno = 218 (0xda), region = 40  ;;  %s232_s30 = sand.u32 (!%p688_p5), 1, %s567_s21  }
  0x2f   : > { %s422_s6 = sshll.u32 (!%p688_p5), %s232_s30, 3  ;;  %s233_s25 = scalar_lea.sflag (!%p688_p5), [#allocation4], %s232_s30 }
  0x30   : > { %s236_s26 = scalar_lea.vmem (!%p688_p5), [#allocation3], %s422_s6 }
  0x33   : > { %554 = dma.done.wait (%p650_p7), %s233_s25, 128  }
  0x34   : > { %556 = vsyncadd (%p650_p7), %s233_s25, 4294967168  ;;  %s243_s8 = scalar_lea.sflag [#allocation6], %s232_s30  ;;  %s246_s9 = scalar_lea.vmem [#allocation5], %s422_s6 }
  0x35   : > { %558 = dma.done.wait (%p650_p7), %s243_s8, 128  }
  0x36   : > { %560 = vsyncadd (%p650_p7), %s243_s8, 4294967168  ;;  %v282_v0 = vld [vmem:[%s236_s26] sm:$0xff]  ;;  %vm291_vm0 = vcmask 261120   ;;  %v283_v4 = vld [vmem:[%s246_s9] sm:$0xff]  ;;  %s286_s29 = sld [smem:[#allocation2]]  ;;  %p278_p7 = scmp.lt.s32.totalorder %s629_s4, 1 }
  0x37   : > { %v471_v1 = vld [vmem:[%s744_s2] ss:$0 sm:$0xff]  ;;  %vm324_vm3 = vcmask 7168  }
  0x38   : > { %v290_v2 = vmul.f32 %v471_v1, %v282_v0  ;;  %v472_v3 = vld [vmem:[%s745_s3] ss:$0 sm:$0xff]  ;;  %s757_s4 = smov (!%p278_p7, %s629_s4), 1 }
  0x39   : > { %v298_v6 = vmul.f32 %v472_v3, %v283_v4  ;;  %s424_s16 = sshll.u32 %s757_s4, 3 }
  0x3a   : > { %v292_v5 = vsel %vm291_vm0, %v290_v2, 0.0  ;;  %s281_s19 = scalar_lea.vmem %s747_s5, %s424_s16 }
  0x3b   : > { %293 = vadd.xlane.f32.xlu0 %v292_v5  ;;  %v299_v7 = vsel %vm291_vm0, %v298_v6, 0.0 }
  0x3c   : > { %v303_v9 = vstv %s286_s29 }
  0x43   : > { %300 = vadd.xlane.f32.xlu0 %v299_v7 }
  0xae   : > { %v294_v8 = vpop.xlane.xlu0 %293 }
  0xb6   : > { %v301_v10 = vpop.xlane.xlu0 %300 }
  0xb7   : > { %v302_v11 = vadd.f32 %v301_v10, %v294_v8 }
  0xb9   : > { %v304_v12 = vadd.f32 %v303_v9, %v302_v11 }
  0xbb   : > { %v305_v13 = vsub.f32 0.0, %v304_v12 }
  0xbd   : > { %v306_v14 = vmul.f32 1.442695, %v305_v13 }
  0xbf   : > { %473 = vpow2.f32 %v306_v14 }
  0xc5   : > { %v474_v15 = vpop.eup %473 }
  0xc6   : > { %v308_v16 = vadd.f32 1.0, %v474_v15 }
  0xc8   : > { %475 = vrcp.f32 %v308_v16  ;;  %v320_v20 = vand.u32 2147483648, %v308_v16  ;;  %v318_v22 = vand.u32 2147483647, %v308_v16  ;;  %vm314_vm2 = vweird.f32 %v308_v16 }
  0xca   : > { %v321_v24 = vor.u32 1.1754944e-38, %v320_v20  ;;  %vm319_vm5 = vcmp.eq.f32.partialorder %v318_v22, 8.507059e+37 }
  0xce   : > { %v476_v17 = vpop.eup %475 }
  0xcf   : > { %v310_v18 = vmul.f32 %v476_v17, %v308_v16  ;;  %vm315_vm1 = vweird.f32 %v476_v17 }
  0xd0   : > { %vm316_vm4 = vmor %vm314_vm2, %vm315_vm1 }
  0xd1   : > { %v311_v19 = vsub.f32 1.0, %v310_v18 }
  0xd3   : > { %v312_v21 = vmul.f32 %v476_v17, %v311_v19 }
  0xd5   : > { %v313_v23 = vadd.f32 %v476_v17, %v312_v21 }
  0xd7   : > { %v317_v25 = vsel %vm316_vm4, %v476_v17, %v313_v23 }
  0xd8   : > { %v322_v26 = vsel %vm319_vm5, %v321_v24, %v317_v25 }
  0xd9   : > { %325 = vst.msk [vmem:[%s281_s19] sm:$0xff] %vm324_vm3, %v322_v26 }
  0xda PF: > { %p19_p8 = scmp.ge.s32.totalorder %s632_s24, 4   ;;  %s752_s20 = smov %s567_s21 }
  0xdb   : > { %s753_s21 = smov %s571_s22  ;;  %s754_s22 = smov %s642_s27 }
  0xdc   : > { %s755_s23 = smov %s632_s24  ;;  %21 = sbr.rel (!%p19_p8) target bundleno = 7 (0x7), region = 93 }
  0xe1   :  { %345 = vsyncpa [#allocation4], 1 }
  0xe2   :  { %347 = vsyncpa [#allocation4 + $0x1], 1 }
  0xe3   :  { %348 = vsyncpa [#allocation6], 1 }
  0xe4   :  { %350 = vsyncpa [#allocation6 + $0x1], 1 }

</bundles_post_ra>
